<compile_context>
chip_gen: v7x
topology: tpu7x:2x2x1
jax: 0.10.0
libtpu: 0.0.40
codegen_flags: <defaults>
</compile_context>

<pallas_src>
import functools

import jax
import jax.numpy as jnp
from jax import lax
from jax.experimental import pallas as pl
from jax.experimental.pallas import tpu as pltpu

_LANES = 128

# Packed param layout (flat (13,) f32 SMEM vector):
#   [0:4]   source layer : tau, leak, rest, bias
#   [4:8]   dest   layer : tau, leak, rest, bias
#   [8:12]  synapse      : gmax, reversal, e_lo, e_hi
#   [12]    inv_span = 1 / (e_hi - e_lo)   (precomputed in wrapper)


def _slab_rows(n, lanes=_LANES):
    """Rows of a lane-dense (rows, 128) slab holding n elements (rows % 8 == 0)."""
    rows = pl.cdiv(n, lanes)
    return max(8, ((rows + 7) // 8) * 8)


def _pack_params(src_params, dst_params, syn_params):
    src = jnp.asarray(src_params, jnp.float32)
    dst = jnp.asarray(dst_params, jnp.float32)
    syn = jnp.asarray(syn_params, jnp.float32)
    inv_span = (1.0 / (syn[3] - syn[2]))[None]   # hoisted out of the hot path
    return jnp.concatenate([src, dst, syn, inv_span])


def _to_slab(a, n, R, fill):
    """Flatten to a lane-dense (R, 128) f32 slab; pad region filled with `fill`."""
    flat = a.astype(jnp.float32).reshape(-1)
    pad = R * _LANES - n
    tail = jnp.full((pad,), fill, dtype=jnp.float32)
    return jnp.concatenate([flat, tail]).reshape(R, _LANES)


def _from_slab(s, n, shape):
    return s.reshape(-1)[:n].reshape(shape)


def _step_math(ss, sd, x, tau_s, leak_s, rest_s, bias_s,
               tau_d, leak_d, rest_d, bias_d, gmax, rev, e_lo, inv_span):
    """One SimpleNet step on lane-dense f32 tiles; returns (new_ss, new_sd)."""
    act = jnp.clip((ss - e_lo) * inv_span, 0.0, 1.0)
    i_syn = gmax * act * (rev - sd)
    new_ss = ss + tau_s * (-leak_s * (ss - rest_s) + bias_s + x)
    new_sd = sd + tau_d * (-leak_d * (sd - rest_d) + bias_d + i_syn)
    return new_ss, new_sd


# ---------------------------------------------------------------------------
# Single-step kernel (matches SimpleNet.forward exactly)
# ---------------------------------------------------------------------------
def simplenet_step_kernel(p_ref, x_ref, ss_ref, sd_ref, new_ss_ref, new_sd_ref):
    (tau_s, leak_s, rest_s, bias_s,
     tau_d, leak_d, rest_d, bias_d,
     gmax, rev, e_lo, _e_hi, inv_span) = [p_ref[i] for i in range(13)]
    new_ss, new_sd = _step_math(ss_ref[...], sd_ref[...], x_ref[...],
                                tau_s, leak_s, rest_s, bias_s,
                                tau_d, leak_d, rest_d, bias_d,
                                gmax, rev, e_lo, inv_span)
    new_ss_ref[...] = new_ss
    new_sd_ref[...] = new_sd


@jax.jit
def simplenet_forward(src_params, dst_params, syn_params, x, state_source, state_dest):
    """One forward step. Inputs are (B, N) f32; returns (new_ss, new_sd) same shape."""
    orig_shape = state_source.shape
    n = state_source.size
    R = _slab_rows(n)

    params = _pack_params(src_params, dst_params, syn_params)
    rest_s = params[2]
    rest_d = params[6]

    smem = pl.BlockSpec(memory_space=pltpu.MemorySpace.SMEM)
    vmem = pl.BlockSpec(memory_space=pltpu.MemorySpace.VMEM)
    new_ss, new_sd = pl.pallas_call(
        simplenet_step_kernel,
        out_shape=(jax.ShapeDtypeStruct((R, _LANES), jnp.float32),
                   jax.ShapeDtypeStruct((R, _LANES), jnp.float32)),
        in_specs=[smem, vmem, vmem, vmem],
        out_specs=(vmem, vmem),
        input_output_aliases={2: 0, 3: 1},   # ss -> new_ss, sd -> new_sd (in place)
    )(params,
      _to_slab(x, n, R, 0.0),
      _to_slab(state_source, n, R, rest_s),
      _to_slab(state_dest, n, R, rest_d))

    return _from_slab(new_ss, n, orig_shape), _from_slab(new_sd, n, orig_shape)


# ---------------------------------------------------------------------------
# Multi-step kernel: T forward steps in ONE pallas_call, TB steps per grid
# iteration. States live in VMEM scratch across the whole grid; x is streamed
# one (TB, R, 128) block per grid step; outputs are written once at the end.
# ---------------------------------------------------------------------------
def _make_multistep_kernel(tb, needs_mask):
    def kernel(p_ref, tcount_ref, x_ref, ss_ref, sd_ref,
               new_ss_ref, new_sd_ref, ss_sc, sd_sc):
        t = pl.program_id(0)
        nt = pl.num_programs(0)

        @pl.when(t == 0)
        def _():
            ss_sc[...] = ss_ref[...]
            sd_sc[...] = sd_ref[...]

        # Hoist all scalar work out of the inner loop: read the 13 params from
        # SMEM and broadcast to vreg-shaped constants once per grid iteration.
        (tau_s, leak_s, rest_s, bias_s,
         tau_d, leak_d, rest_d, bias_d,
         gmax, rev, e_lo, _e_hi, inv_span) = [p_ref[i] for i in range(13)]
        shape = ss_sc.shape
        bc = lambda s: jnp.full(shape, s, dtype=jnp.float32)
        tau_s, leak_s, rest_s, bias_s = bc(tau_s), bc(leak_s), bc(rest_s), bc(bias_s)
        tau_d, leak_d, rest_d, bias_d = bc(tau_d), bc(leak_d), bc(rest_d), bc(bias_d)
        gmax, rev, e_lo, inv_span = bc(gmax), bc(rev), bc(e_lo), bc(inv_span)

        t_total = tcount_ref[0]
        base = t * tb

        def body(i, carry):
            ss, sd = carry
            x = x_ref[i]
            new_ss, new_sd = _step_math(ss, sd, x,
                                        tau_s, leak_s, rest_s, bias_s,
                                        tau_d, leak_d, rest_d, bias_d,
                                        gmax, rev, e_lo, inv_span)
            if needs_mask:
                # Only compiled in when T % TB != 0: blend keeps the padded
                # tail steps from advancing the state.
                m = ((base + i) < t_total).astype(jnp.float32)
                new_ss = ss + m * (new_ss - ss)
                new_sd = sd + m * (new_sd - sd)
            return new_ss, new_sd

        ss, sd = lax.fori_loop(0, tb, body, (ss_sc[...], sd_sc[...]), unroll=True)

        ss_sc[...] = ss
        sd_sc[...] = sd

        @pl.when(t == nt - 1)
        def _():
            new_ss_ref[...] = ss
            new_sd_ref[...] = sd

    return kernel


@functools.partial(jax.jit, static_argnames=("tb",))
def simplenet_forward_steps(src_params, dst_params, syn_params,
                            x_seq, state_source, state_dest, tb=None):
    """Run T forward steps inside one kernel. x_seq is (T, B, N)."""
    T = x_seq.shape[0]
    orig_shape = state_source.shape
    n = state_source.size
    R = _slab_rows(n)
    pad = R * _LANES - n

    if tb is None:
        # Keep the double-buffered x block comfortably small (~2 MiB budget),
        # well under every chip's scoped-VMEM default (16/32 MiB).
        bytes_per_step = R * _LANES * 4
        tb = max(1, (2 << 20) // (2 * bytes_per_step))
        tb = min(tb, 128)
    tb = max(1, min(int(tb), T))

    num_blocks = pl.cdiv(T, tb)
    T_pad = num_blocks * tb
    needs_mask = (T_pad != T)

    params = _pack_params(src_params, dst_params, syn_params)
    rest_s = params[2]
    rest_d = params[6]

    x_flat = x_seq.astype(jnp.float32).reshape(T, n)
    x_flat = jnp.pad(x_flat, ((0, T_pad - T), (0, pad)))
    x_slab = x_flat.reshape(T_pad, R, _LANES)

    ss_slab = _to_slab(state_source, n, R, rest_s)
    sd_slab = _to_slab(state_dest, n, R, rest_d)
    t_count = jnp.array([T], dtype=jnp.int32)

    smem = pl.BlockSpec(memory_space=pltpu.MemorySpace.SMEM)
    new_ss, new_sd = pl.pallas_call(
        _make_multistep_kernel(tb, needs_mask),
        out_shape=(jax.ShapeDtypeStruct((R, _LANES), jnp.float32),
                   jax.ShapeDtypeStruct((R, _LANES), jnp.float32)),
        grid=(num_blocks,),
        in_specs=[
            smem,                                                   # packed params
            smem,                                                   # true T (mask)
            pl.BlockSpec((tb, R, _LANES), lambda t: (t, 0, 0)),     # x block, step t
            pl.BlockSpec((R, _LANES), lambda t: (0, 0)),            # initial ss
            pl.BlockSpec((R, _LANES), lambda t: (0, 0)),            # initial sd
        ],
        out_specs=(
            pl.BlockSpec((R, _LANES), lambda t: (0, 0)),            # final ss
            pl.BlockSpec((R, _LANES), lambda t: (0, 0)),            # final sd
        ),
        scratch_shapes=[pltpu.VMEM((R, _LANES), jnp.float32),       # resident ss
                        pltpu.VMEM((R, _LANES), jnp.float32)],      # resident sd
        input_output_aliases={3: 0, 4: 1},                          # donate state slabs
        compiler_params=pltpu.CompilerParams(
            dimension_semantics=("arbitrary",)),                    # sequential in time
    )(params, t_count, x_slab, ss_slab, sd_slab)

    return _from_slab(new_ss, n, orig_shape), _from_slab(new_sd, n, orig_shape)


# ---------------------------------------------------------------------------
# Pure-JAX reference
# ---------------------------------------------------------------------------
def simplenet_ref(src_params, dst_params, syn_params, x, ss, sd):
    gmax, rev, e_lo, e_hi = syn_params
    act = jnp.clip((ss - e_lo) / (e_hi - e_lo), 0.0, 1.0)
    i_syn = gmax * act * (rev - sd)
    tau_s, leak_s, rest_s, bias_s = src_params
    tau_d, leak_d, rest_d, bias_d = dst_params
    new_ss = ss + tau_s * (-leak_s * (ss - rest_s) + bias_s + x)
    new_sd = sd + tau_d * (-leak_d * (sd - rest_d) + bias_d + i_syn)
    return new_ss, new_sd


if __name__ == "__main__":
    # Deterministic parameters ([tau, leak, rest, bias] per layer; synapse
    # [gmax, reversal, e_lo, e_hi]).
    src_params = jnp.array([0.5, 1.0, 0.0, 0.1], dtype=jnp.float32)
    dst_params = jnp.array([0.3, 1.0, 0.0, 0.0], dtype=jnp.float32)
    syn_params = jnp.array([1.0, 2.0, 0.0, 1.0], dtype=jnp.float32)

    # Shapes consistent with module.init(batch_size=8) and shape=[1]: (B, 1)
    B = 8
    key = jax.random.PRNGKey(0)
    kx, ks, kd, kt = jax.random.split(key, 4)
    x = jax.random.normal(kx, (B, 1), dtype=jnp.float32)
    state_source = jax.random.normal(ks, (B, 1), dtype=jnp.float32)
    state_dest = jax.random.normal(kd, (B, 1), dtype=jnp.float32)

    # --- single step ---
    new_ss, new_sd = simplenet_forward(src_params, dst_params, syn_params,
                                       x, state_source, state_dest)
    jax.block_until_ready((new_ss, new_sd))
    ref_ss, ref_sd = simplenet_ref(src_params, dst_params, syn_params,
                                   x, state_source, state_dest)
    assert jnp.allclose(new_ss, ref_ss, atol=1e-6), "state_source mismatch"
    assert jnp.allclose(new_sd, ref_sd, atol=1e-6), "state_dest mismatch"

    def ref_rollout(x_seq, ss, sd):
        for t in range(x_seq.shape[0]):
            ss, sd = simplenet_ref(src_params, dst_params, syn_params,
                                   x_seq[t], ss, sd)
        return ss, sd

    # --- T steps fused into one kernel launch (T divisible by TB) ---
    T1 = 64
    x_seq1 = jax.random.normal(kt, (T1, B, 1), dtype=jnp.float32)
    ms_ss, ms_sd = simplenet_forward_steps(src_params, dst_params, syn_params,
                                           x_seq1, state_source, state_dest, tb=16)
    jax.block_until_ready((ms_ss, ms_sd))
    r_ss, r_sd = ref_rollout(x_seq1, state_source, state_dest)
    assert jnp.allclose(ms_ss, r_ss, atol=1e-5), "multi-step state_source mismatch"
    assert jnp.allclose(ms_sd, r_sd, atol=1e-5), "multi-step state_dest mismatch"

    # --- ragged T (exercises the masked-tail path) ---
    T2 = 50
    x_seq2 = x_seq1[:T2]
    ms_ss2, ms_sd2 = simplenet_forward_steps(src_params, dst_params, syn_params,
                                             x_seq2, state_source, state_dest, tb=16)
    jax.block_until_ready((ms_ss2, ms_sd2))
    r_ss2, r_sd2 = ref_rollout(x_seq2, state_source, state_dest)
    assert jnp.allclose(ms_ss2, r_ss2, atol=1e-5), "ragged-T state_source mismatch"
    assert jnp.allclose(ms_sd2, r_sd2, atol=1e-5), "ragged-T state_dest mismatch"

    print("KERNEL_OK")
</pallas_src>

<mosaic_0001>
module attributes {stable_mosaic.version = 11 : i64} {
  func.func @simplenet_step_kernel(%arg0: memref<13xf32, #tpu.memory_space<smem>>, %arg1: memref<8x128xf32, #tpu.memory_space<vmem>>, %arg2: memref<8x128xf32, #tpu.memory_space<vmem>>, %arg3: memref<8x128xf32, #tpu.memory_space<vmem>>, %arg4: memref<8x128xf32, #tpu.memory_space<vmem>>, %arg5: memref<8x128xf32, #tpu.memory_space<vmem>>) attributes {dimension_semantics = [], scalar_prefetch = 0 : i64, scratch_operands = 0 : i64, tpu.core_type = #tpu.core_type<tc>} {
    %c0 = arith.constant 0 : index
    %0 = memref.load %arg0[%c0] : memref<13xf32, #tpu.memory_space<smem>>
    %c1 = arith.constant 1 : index
    %1 = memref.load %arg0[%c1] : memref<13xf32, #tpu.memory_space<smem>>
    %c2 = arith.constant 2 : index
    %2 = memref.load %arg0[%c2] : memref<13xf32, #tpu.memory_space<smem>>
    %c3 = arith.constant 3 : index
    %3 = memref.load %arg0[%c3] : memref<13xf32, #tpu.memory_space<smem>>
    %c4 = arith.constant 4 : index
    %4 = memref.load %arg0[%c4] : memref<13xf32, #tpu.memory_space<smem>>
    %c5 = arith.constant 5 : index
    %5 = memref.load %arg0[%c5] : memref<13xf32, #tpu.memory_space<smem>>
    %c6 = arith.constant 6 : index
    %6 = memref.load %arg0[%c6] : memref<13xf32, #tpu.memory_space<smem>>
    %c7 = arith.constant 7 : index
    %7 = memref.load %arg0[%c7] : memref<13xf32, #tpu.memory_space<smem>>
    %c8 = arith.constant 8 : index
    %8 = memref.load %arg0[%c8] : memref<13xf32, #tpu.memory_space<smem>>
    %c9 = arith.constant 9 : index
    %9 = memref.load %arg0[%c9] : memref<13xf32, #tpu.memory_space<smem>>
    %c10 = arith.constant 10 : index
    %10 = memref.load %arg0[%c10] : memref<13xf32, #tpu.memory_space<smem>>
    %c12 = arith.constant 12 : index
    %11 = memref.load %arg0[%c12] : memref<13xf32, #tpu.memory_space<smem>>
    %c0_0 = arith.constant 0 : index
    %c0_1 = arith.constant 0 : index
    %12 = vector.load %arg2[%c0_0, %c0_1] : memref<8x128xf32, #tpu.memory_space<vmem>>, vector<8x128xf32>
    %c0_2 = arith.constant 0 : index
    %c0_3 = arith.constant 0 : index
    %13 = vector.load %arg3[%c0_2, %c0_3] : memref<8x128xf32, #tpu.memory_space<vmem>>, vector<8x128xf32>
    %c0_4 = arith.constant 0 : index
    %c0_5 = arith.constant 0 : index
    %14 = vector.load %arg1[%c0_4, %c0_5] : memref<8x128xf32, #tpu.memory_space<vmem>>, vector<8x128xf32>
    %15 = vector.broadcast %10 : f32 to vector<8x128xf32>
    %16 = arith.subf %12, %15 : vector<8x128xf32>
    %17 = vector.broadcast %11 : f32 to vector<8x128xf32>
    %18 = arith.mulf %16, %17 : vector<8x128xf32>
    %cst = arith.constant 0.000000e+00 : f32
    %cst_6 = arith.constant 1.000000e+00 : f32
    %19 = vector.broadcast %cst : f32 to vector<8x128xf32>
    %20 = arith.maximumf %19, %18 : vector<8x128xf32>
    %21 = vector.broadcast %cst_6 : f32 to vector<8x128xf32>
    %22 = arith.minimumf %21, %20 : vector<8x128xf32>
    %23 = vector.broadcast %8 : f32 to vector<8x128xf32>
    %24 = arith.mulf %23, %22 : vector<8x128xf32>
    %25 = vector.broadcast %9 : f32 to vector<8x128xf32>
    %26 = arith.subf %25, %13 : vector<8x128xf32>
    %27 = arith.mulf %24, %26 : vector<8x128xf32>
    %cst_7 = arith.constant 0.000000e+00 : f32
    %28 = arith.subf %cst_7, %1 : f32
    %29 = vector.broadcast %2 : f32 to vector<8x128xf32>
    %30 = arith.subf %12, %29 : vector<8x128xf32>
    %31 = vector.broadcast %28 : f32 to vector<8x128xf32>
    %32 = arith.mulf %31, %30 : vector<8x128xf32>
    %33 = vector.broadcast %3 : f32 to vector<8x128xf32>
    %34 = arith.addf %32, %33 : vector<8x128xf32>
    %35 = arith.addf %34, %14 : vector<8x128xf32>
    %36 = vector.broadcast %0 : f32 to vector<8x128xf32>
    %37 = arith.mulf %36, %35 : vector<8x128xf32>
    %38 = arith.addf %12, %37 : vector<8x128xf32>
    %cst_8 = arith.constant 0.000000e+00 : f32
    %39 = arith.subf %cst_8, %5 : f32
    %40 = vector.broadcast %6 : f32 to vector<8x128xf32>
    %41 = arith.subf %13, %40 : vector<8x128xf32>
    %42 = vector.broadcast %39 : f32 to vector<8x128xf32>
    %43 = arith.mulf %42, %41 : vector<8x128xf32>
    %44 = vector.broadcast %7 : f32 to vector<8x128xf32>
    %45 = arith.addf %43, %44 : vector<8x128xf32>
    %46 = arith.addf %45, %27 : vector<8x128xf32>
    %47 = vector.broadcast %4 : f32 to vector<8x128xf32>
    %48 = arith.mulf %47, %46 : vector<8x128xf32>
    %49 = arith.addf %13, %48 : vector<8x128xf32>
    %c0_9 = arith.constant 0 : index
    %c0_10 = arith.constant 0 : index
    %50 = vector.load %arg4[%c0_9, %c0_10] : memref<8x128xf32, #tpu.memory_space<vmem>>, vector<8x128xf32>
    tpu.vector_store %arg4[%c0_9, %c0_10], %38 {strides = array<i32>} : memref<8x128xf32, #tpu.memory_space<vmem>>, vector<8x128xf32>,
    %c0_11 = arith.constant 0 : index
    %c0_12 = arith.constant 0 : index
    %51 = vector.load %arg5[%c0_11, %c0_12] : memref<8x128xf32, #tpu.memory_space<vmem>>, vector<8x128xf32>
    tpu.vector_store %arg5[%c0_11, %c0_12], %49 {strides = array<i32>} : memref<8x128xf32, #tpu.memory_space<vmem>>, vector<8x128xf32>,
    return
  }
}

</mosaic_0001>

<bundles_post_ra>
// kernel: simplenet_forward.1
= control target key start
LH: loop header
LB: loop body
LE: loop exit
PB: predicated region body
PF: predicated region fallthrough
CT: control target
= control target key end

     0   :  { %11 = vsyncpa [#allocation3], 0  ;;  %s172_s0 = inlined_call_operand.vmem [shape: f32[13], index: 0, kind: input, shape index: {}]   ;;  %s173_s1 = inlined_call_operand.vmem [shape: f32[8,128], index: 1, kind: input, shape index: {}]   ;;  %s174_s2 = inlined_call_operand.vmem [shape: f32[8,128], index: 2, kind: input, shape index: {}, may-alias: {2,4}]   ;;  %s175_s3 = inlined_call_operand.vmem [shape: f32[8,128], index: 3, kind: input, shape index: {}, may-alias: {3,5}]   ;;  %s176_s4 = inlined_call_operand.vmem [shape: f32[8,128], index: 4, kind: output, shape index: {0}, may-alias: {2,4}]   ;;  %s177_s5 = inlined_call_operand.vmem [shape: f32[8,128], index: 5, kind: output, shape index: {1}, may-alias: {3,5}]  }
   0x1   :  { %s18_s20 = sshll.u32 %s172_s0, 4  ;;  %s19_s20 = int_to_ptr.vmem [resolvable:$true] %s18_s20 }
   0x2   :  { %s103_s21 = scalar_lea.vmem %s19_s20, 16  ;;  %p108_p1 = scmp.lt.s32.totalorder %s19_s20, %s19_s20 }
   0x3   :  { %p104_p0 = scmp.ne.s32.totalorder %s19_s20, %s103_s21  ;;  %p109_p2 = scmp.lt.s32.totalorder %s103_s21, %s103_s21 }
   0x5   :  { %p110_p3 = por %p109_p2, %p108_p1 }
   0x7   :  { %p111_p4 = pnand %p110_p3, %p104_p0 }
   0x9   :  { %114 = shalt.err (!%p111_p4)
}
   0xa   :  { %s117_s22 = smov [#allocation2]  }
   0xb   :  { %21 = dma.vmem_to_smem %s19_s20, 16, %s117_s22, [#allocation3]  }
   0xc   :  { %115 = dma.done.wait [#allocation3], 16  }
   0xd   :  { %116 = vsyncadd [#allocation3], 4294967280 }
   0xe   :  { %31 = sfence }
   0xf   :  { %s91_s23 = sld [smem:[#allocation2 + $0x1]]  ;;  %s92_s24 = sld [smem:[#allocation2 + $0x2]]  ;;  %v44_v0 = vld [vmem:[%s174_s2] sm:$0xff] }
  0x10   :  { %s93_s25 = sld [smem:[#allocation2 + $0x3]]  ;;  %s100_s26 = sld [smem:[#allocation2 + $0xa]]  ;;  %v45_v6 = vld [vmem:[%s175_s3] sm:$0xff] }
  0x11   :  { %s101_s27 = sld [smem:[#allocation2 + $0xc]]  ;;  %s95_s28 = sld [smem:[#allocation2 + $0x5]]  ;;  %v46_v11 = vld [vmem:[%s173_s1] sm:$0xff] }
  0x12   :  { %s151_s0 = sld [smem:[#allocation2]]  ;;  %s96_s29 = sld [smem:[#allocation2 + $0x6]] }
  0x13   :  { %s153_s30 = sld [smem:[#allocation2 + $0x7]]  ;;  %s99_s6 = sld [smem:[#allocation2 + $0x9]] }
  0x14   :  { %s98_s10 = sld [smem:[#allocation2 + $0x8]]  ;;  %s94_s15 = sld [smem:[#allocation2 + $0x4]] }
  0x15   :  { %s58_s9 = ssub.f32 0.0, %s91_s23  ;;  %v59_v1 = vstv %s92_s24 }
  0x16   :  { %v47_v2 = vstv %s100_s26  ;;  %v60_v4 = vsub.f32 %v44_v0, %v59_v1  ;;  %v63_v8 = vstv %s93_s25 }
  0x17   :  { %v49_v3 = vstv %s101_s27  ;;  %v61_v5 = vstv %s58_s9  ;;  %v48_v7 = vsub.f32 %v44_v0, %v47_v2  ;;  %s69_s13 = ssub.f32 0.0, %s95_s28 }
  0x18   :  { %v62_v9 = vmul.f32 %v61_v5, %v60_v4  ;;  %v70_v10 = vstv %s96_s29  ;;  %v66_v18 = vstv %s151_s0 }
  0x19   :  { %v50_v12 = vmul.f32 %v49_v3, %v48_v7  ;;  %v71_v13 = vsub.f32 %v45_v6, %v70_v10  ;;  %v55_v15 = vstv %s99_s6  ;;  %v72_v16 = vstv %s69_s13 }
  0x1a   :  { %v64_v14 = vadd.f32 %v63_v8, %v62_v9  ;;  %v53_v21 = vstv %s98_s10  ;;  %v74_v22 = vstv %s153_s30  ;;  %v56_v24 = vsub.f32 %v55_v15, %v45_v6 }
  0x1b   :  { %v51_v17 = vmax.f32 %v50_v12, 0.0  ;;  %v73_v19 = vmul.f32 %v72_v16, %v71_v13  ;;  %v77_v30 = vstv %s94_s15 }
  0x1c   :  { %v65_v20 = vadd.f32 %v64_v14, %v46_v11 }
  0x1d   :  { %v52_v23 = vmin.f32 %v51_v17, 1.0  ;;  %v75_v27 = vadd.f32 %v74_v22, %v73_v19 }
  0x1e   :  { %v67_v25 = vmul.f32 %v66_v18, %v65_v20 }
  0x1f   :  { %v54_v26 = vmul.f32 %v53_v21, %v52_v23 }
  0x20   :  { %v68_v28 = vadd.f32 %v67_v25, %v44_v0 }
  0x21   :  { %v57_v29 = vmul.f32 %v56_v24, %v54_v26 }
  0x22   :  { %80 = vst [vmem:[%s176_s4] sm:$0xff] %v68_v28 }
  0x23   :  { %v76_v31 = vadd.f32 %v75_v27, %v57_v29 }
  0x25   :  { %v78_v32 = vmul.f32 %v77_v30, %v76_v31 }
  0x27   :  { %v79_v33 = vadd.f32 %v78_v32, %v45_v6 }
  0x29   :  { %81 = vst [vmem:[%s177_s5] sm:$0xff] %v79_v33 }
  0x2a   :  { %90 = vsyncpa [#allocation3], 1 }

</bundles_post_ra>
